<compile_context>
chip_gen: v6e
topology: v6e:2x2x1
jax: 0.10.0
libtpu: 0.0.40
codegen_flags: <defaults>
</compile_context>

<pallas_src>
import functools

import jax
import jax.numpy as jnp
from jax.experimental import pallas as pl
from jax.experimental.pallas import tpu as pltpu


HIDDEN = 64


def _round_up(x, m):
    return ((x + m - 1) // m) * m


def critic_kernel(x_ref, w1_ref, b1_ref, w2_ref, b2_ref, w3_ref, b3_ref, out_ref):
    """One batch tile.

    x_ref:  (TB, D)   input rows for this tile (f32)
    w1_ref: (64, D), w2_ref: (64, 64)   PyTorch [out, in] layout, compute dtype (bf16/f32)
    w3_ref: (64, 1)   value head as a column (f32)
    b*_ref: column biases (64,1), (64,1), (1,1) (f32)
    out_ref:(1, TB)   value per batch row, lane-dense along the batch axis
    """
    cdt = w1_ref.dtype                               # compute dtype chosen by the wrapper
    x = x_ref[...].astype(cdt)                       # (TB, D)

    # fc1: contract the in-feature axis of both operands -> transposed activations.
    # h1[f, b] = sum_d w1[f, d] * x[b, d]            -> (64, TB), f32 accumulation on MXU.
    h1 = jax.lax.dot_general(w1_ref[...], x, (((1,), (1,)), ((), ())),
                             preferred_element_type=jnp.float32)
    h1 = jnp.maximum(h1 + b1_ref[...], 0.0)          # bias (64,1) broadcasts over lanes

    # fc2: (64, 64) @ (64, TB) -> (64, TB), f32 accumulation on MXU.
    h2 = jnp.dot(w2_ref[...], h1.astype(cdt), preferred_element_type=jnp.float32)
    h2 = jnp.maximum(h2 + b2_ref[...], 0.0)

    # fc3 (value head) on VPU + XLU: broadcast-mul then sublane reduce -> (1, TB),
    # feeding the lane-dense store directly (no MXU pass for an N=1 output).
    v = jnp.sum(h2 * w3_ref[...], axis=0, keepdims=True) + b3_ref[...]
    out_ref[...] = v.astype(out_ref.dtype)


def critic_forward(state, params, *, block_b=1024, use_bf16=True):
    """state: [B, input_dims] float32 -> value: [B, 1] float32."""
    w1, b1, w2, b2, w3, b3 = params
    B, D = state.shape

    cdt = jnp.bfloat16 if use_bf16 else jnp.float32
    w1c = w1.astype(cdt)                  # cast once in the wrapper; kernel DMAs bf16
    w2c = w2.astype(cdt)

    # Batch tile: multiple of 128 (lane-dense output stores), capped by block_b.
    tb = min(_round_up(block_b, 128), _round_up(B, 128))
    grid_b = pl.cdiv(B, tb)
    b_pad = grid_b * tb
    if b_pad != B:
        state = jnp.pad(state, ((0, b_pad - B), (0, 0)))

    n_param_bytes = (w1c.size + w2c.size) * cdt.dtype.itemsize \
        + 4 * (b1.size + b2.size + w3.size + b3.size)
    cost = pl.CostEstimate(
        flops=2 * b_pad * (D * HIDDEN + HIDDEN * HIDDEN + HIDDEN),
        transcendentals=0,
        bytes_accessed=4 * (b_pad * D + b_pad) + n_param_bytes,
    )

    resident = lambda shape: pl.BlockSpec(shape, lambda i: (0, 0))  # VMEM-resident params

    out = pl.pallas_call(
        critic_kernel,
        out_shape=jax.ShapeDtypeStruct((1, b_pad), jnp.float32),
        grid_spec=pltpu.PrefetchScalarGridSpec(
            num_scalar_prefetch=0,
            grid=(grid_b,),
            in_specs=[
                pl.BlockSpec((tb, D), lambda i: (i, 0)),   # batch-tiled activations
                resident(w1c.shape), resident(b1.shape),
                resident(w2c.shape), resident(b2.shape),
                resident(w3.shape), resident(b3.shape),
            ],
            out_specs=pl.BlockSpec((1, tb), lambda i: (0, i)),  # lane-dense value slab
        ),
        compiler_params=pltpu.CompilerParams(
            dimension_semantics=("parallel",),      # shard batch tiles across TCs
            vmem_limit_bytes=32 * 1024 * 1024,      # safe on v5e/v6e (128 MiB) and v7x (64 MiB)
        ),
        cost_estimate=cost,
    )(state, w1c, b1, w2c, b2, w3, b3)

    return out[0, :B].reshape(B, 1)


def init_params(key, input_dims):
    """Deterministic PyTorch nn.Linear-style init.

    fc1/fc2 weights kept in [out, in] layout, the value head as a (64, 1) column,
    biases as columns ([out, 1]) so they broadcast over the lane (batch) axis.
    """
    ks = jax.random.split(key, 6)

    def lin(kw, kb, fan_in, fan_out):
        bound = 1.0 / jnp.sqrt(jnp.float32(fan_in))
        w = jax.random.uniform(kw, (fan_out, fan_in), jnp.float32, -bound, bound)
        b = jax.random.uniform(kb, (fan_out, 1), jnp.float32, -bound, bound)
        return w, b

    w1, b1 = lin(ks[0], ks[1], input_dims, HIDDEN)
    w2, b2 = lin(ks[2], ks[3], HIDDEN, HIDDEN)
    w3t, b3 = lin(ks[4], ks[5], HIDDEN, 1)           # w3t: (1, 64), b3: (1, 1)
    return (w1, b1, w2, b2, w3t.T, b3)               # value head stored as (64, 1)


def critic_ref(state, params, use_bf16=False):
    """Plain-JAX reference in the standard [batch, feature] orientation."""
    w1, b1, w2, b2, w3, b3 = params
    cdt = jnp.bfloat16 if use_bf16 else jnp.float32
    h1 = jnp.maximum(jnp.dot(state.astype(cdt), w1.T.astype(cdt),
                             preferred_element_type=jnp.float32) + b1[:, 0], 0.0)
    h2 = jnp.maximum(jnp.dot(h1.astype(cdt), w2.T.astype(cdt),
                             preferred_element_type=jnp.float32) + b2[:, 0], 0.0)
    # Value head stays in f32 (matches the kernel's VPU path).
    return jnp.dot(h2, w3, preferred_element_type=jnp.float32) + b3[0]


if __name__ == "__main__":
    key = jax.random.PRNGKey(0)
    k_params, k_state = jax.random.split(key)

    batch = 300          # deliberately not a multiple of the tile -> exercises padding
    input_dims = 32

    params = init_params(k_params, input_dims)
    state = jax.random.normal(k_state, (batch, input_dims), dtype=jnp.float32)

    # Small tile so the demo runs a multi-step pipelined grid (grid=(3,));
    # production rollout/replay batches would use the default block_b=1024.
    value = critic_forward(state, params, block_b=128, use_bf16=True)
    value = jax.block_until_ready(value)
    assert value.shape == (batch, 1)

    # Tight check vs. a reference that mirrors the kernel math (bf16 dot inputs,
    # f32 accumulation); loose check vs. the pure-f32 PyTorch-equivalent forward.
    ref_bf16 = critic_ref(state, params, use_bf16=True)
    ref_f32 = critic_ref(state, params, use_bf16=False)
    assert jnp.allclose(value, ref_bf16, atol=1e-4, rtol=1e-4), \
        float(jnp.max(jnp.abs(value - ref_bf16)))
    assert jnp.allclose(value, ref_f32, atol=5e-2, rtol=5e-2), \
        float(jnp.max(jnp.abs(value - ref_f32)))

    print("KERNEL_OK")
</pallas_src>

<mosaic_0001>
module attributes {stable_mosaic.version = 11 : i64} {
  func.func @critic_kernel(%arg0: i32, %arg1: memref<128x32xf32, #tpu.memory_space<vmem>>, %arg2: memref<64x32xbf16, #tpu.memory_space<vmem>>, %arg3: memref<64x1xf32, #tpu.memory_space<vmem>>, %arg4: memref<64x64xbf16, #tpu.memory_space<vmem>>, %arg5: memref<64x1xf32, #tpu.memory_space<vmem>>, %arg6: memref<64x1xf32, #tpu.memory_space<vmem>>, %arg7: memref<1x1xf32, #tpu.memory_space<vmem>>, %arg8: memref<1x128xf32, #tpu.memory_space<vmem>>) attributes {dimension_semantics = [#tpu.dimension_semantics<parallel>], iteration_bounds = array<i64: 3>, scalar_prefetch = 0 : i64, scratch_operands = 0 : i64, tpu.core_type = #tpu.core_type<tc>, window_params = [{transform_indices = @transform_0, window_bounds = array<i64: 128, 32>}, {pipeline_mode = #tpu.pipeline_mode<synchronous>, transform_indices = @transform_1, window_bounds = array<i64: 64, 32>}, {pipeline_mode = #tpu.pipeline_mode<synchronous>, transform_indices = @transform_2, window_bounds = array<i64: 64, 1>}, {pipeline_mode = #tpu.pipeline_mode<synchronous>, transform_indices = @transform_3, window_bounds = array<i64: 64, 64>}, {pipeline_mode = #tpu.pipeline_mode<synchronous>, transform_indices = @transform_4, window_bounds = array<i64: 64, 1>}, {pipeline_mode = #tpu.pipeline_mode<synchronous>, transform_indices = @transform_5, window_bounds = array<i64: 64, 1>}, {pipeline_mode = #tpu.pipeline_mode<synchronous>, transform_indices = @transform_6, window_bounds = array<i64: 1, 1>}, {transform_indices = @transform_7, window_bounds = array<i64: 1, 128>}]} {
    %c0 = arith.constant 0 : index
    %c0_0 = arith.constant 0 : index
    %0 = vector.load %arg1[%c0, %c0_0] : memref<128x32xf32, #tpu.memory_space<vmem>>, vector<128x32xf32>
    %1 = arith.truncf %0 : vector<128x32xf32> to vector<128x32xbf16>
    %c0_1 = arith.constant 0 : index
    %c0_2 = arith.constant 0 : index
    %2 = vector.load %arg2[%c0_1, %c0_2] : memref<64x32xbf16, #tpu.memory_space<vmem>>, vector<64x32xbf16>
    %cst = arith.constant dense<0.000000e+00> : vector<64x128xf32>
    %3 = tpu.matmul %2, %1, %cst {dimension_numbers = #tpu.dot_dimension_numbers<[1], [1], [0], [0], [0, 0, 1, 0], [], []>} : vector<64x32xbf16>, vector<128x32xbf16>, vector<64x128xf32> -> vector<64x128xf32>
    %c0_3 = arith.constant 0 : index
    %c0_4 = arith.constant 0 : index
    %4 = vector.load %arg3[%c0_3, %c0_4] : memref<64x1xf32, #tpu.memory_space<vmem>>, vector<64x1xf32>
    %5 = vector.broadcast %4 : vector<64x1xf32> to vector<64x128xf32>
    %6 = arith.addf %3, %5 : vector<64x128xf32>
    %cst_5 = arith.constant 0.000000e+00 : f32
    %7 = vector.broadcast %cst_5 : f32 to vector<64x128xf32>
    %8 = arith.maximumf %6, %7 : vector<64x128xf32>
    %c0_6 = arith.constant 0 : index
    %c0_7 = arith.constant 0 : index
    %9 = vector.load %arg4[%c0_6, %c0_7] : memref<64x64xbf16, #tpu.memory_space<vmem>>, vector<64x64xbf16>
    %10 = arith.truncf %8 : vector<64x128xf32> to vector<64x128xbf16>
    %cst_8 = arith.constant dense<0.000000e+00> : vector<64x128xf32>
    %11 = tpu.matmul %9, %10, %cst_8 {dimension_numbers = #tpu.dot_dimension_numbers<[1], [0], [0], [1], [0, 0, 1, 1], [], []>} : vector<64x64xbf16>, vector<64x128xbf16>, vector<64x128xf32> -> vector<64x128xf32>
    %c0_9 = arith.constant 0 : index
    %c0_10 = arith.constant 0 : index
    %12 = vector.load %arg5[%c0_9, %c0_10] : memref<64x1xf32, #tpu.memory_space<vmem>>, vector<64x1xf32>
    %13 = vector.broadcast %12 : vector<64x1xf32> to vector<64x128xf32>
    %14 = arith.addf %11, %13 : vector<64x128xf32>
    %cst_11 = arith.constant 0.000000e+00 : f32
    %15 = vector.broadcast %cst_11 : f32 to vector<64x128xf32>
    %16 = arith.maximumf %14, %15 : vector<64x128xf32>
    %c0_12 = arith.constant 0 : index
    %c0_13 = arith.constant 0 : index
    %17 = vector.load %arg6[%c0_12, %c0_13] : memref<64x1xf32, #tpu.memory_space<vmem>>, vector<64x1xf32>
    %18 = vector.broadcast %17 : vector<64x1xf32> to vector<64x128xf32>
    %19 = arith.mulf %16, %18 : vector<64x128xf32>
    %cst_14 = arith.constant dense<0.000000e+00> : vector<128xf32>
    %20 = vector.multi_reduction <add>, %19, %cst_14 [0] : vector<64x128xf32> to vector<128xf32>
    %21 = vector.shape_cast %20 : vector<128xf32> to vector<1x128xf32>
    %c0_15 = arith.constant 0 : index
    %c0_16 = arith.constant 0 : index
    %22 = vector.load %arg7[%c0_15, %c0_16] : memref<1x1xf32, #tpu.memory_space<vmem>>, vector<1x1xf32>
    %23 = vector.broadcast %22 : vector<1x1xf32> to vector<1x128xf32>
    %24 = arith.addf %21, %23 : vector<1x128xf32>
    %c0_17 = arith.constant 0 : index
    %c0_18 = arith.constant 0 : index
    %25 = vector.load %arg8[%c0_17, %c0_18] : memref<1x128xf32, #tpu.memory_space<vmem>>, vector<1x128xf32>
    tpu.vector_store %arg8[%c0_17, %c0_18], %24 {strides = array<i32>} : memref<1x128xf32, #tpu.memory_space<vmem>>, vector<1x128xf32>,
    return
  }
  func.func @transform_0(%arg0: i32) -> (i32, i32) {
    %c0_i32 = arith.constant 0 : i32
    %c0_i32_0 = arith.constant 0 : i32
    return %arg0, %c0_i32 : i32, i32
  }
  func.func @transform_1(%arg0: i32) -> (i32, i32) {
    %c0_i32 = arith.constant 0 : i32
    %c0_i32_0 = arith.constant 0 : i32
    %c0_i32_1 = arith.constant 0 : i32
    return %c0_i32, %c0_i32_0 : i32, i32
  }
  func.func @transform_2(%arg0: i32) -> (i32, i32) {
    %c0_i32 = arith.constant 0 : i32
    %c0_i32_0 = arith.constant 0 : i32
    %c0_i32_1 = arith.constant 0 : i32
    return %c0_i32, %c0_i32_0 : i32, i32
  }
  func.func @transform_3(%arg0: i32) -> (i32, i32) {
    %c0_i32 = arith.constant 0 : i32
    %c0_i32_0 = arith.constant 0 : i32
    %c0_i32_1 = arith.constant 0 : i32
    return %c0_i32, %c0_i32_0 : i32, i32
  }
  func.func @transform_4(%arg0: i32) -> (i32, i32) {
    %c0_i32 = arith.constant 0 : i32
    %c0_i32_0 = arith.constant 0 : i32
    %c0_i32_1 = arith.constant 0 : i32
    return %c0_i32, %c0_i32_0 : i32, i32
  }
  func.func @transform_5(%arg0: i32) -> (i32, i32) {
    %c0_i32 = arith.constant 0 : i32
    %c0_i32_0 = arith.constant 0 : i32
    %c0_i32_1 = arith.constant 0 : i32
    return %c0_i32, %c0_i32_0 : i32, i32
  }
  func.func @transform_6(%arg0: i32) -> (i32, i32) {
    %c0_i32 = arith.constant 0 : i32
    %c0_i32_0 = arith.constant 0 : i32
    %c0_i32_1 = arith.constant 0 : i32
    return %c0_i32, %c0_i32_0 : i32, i32
  }
  func.func @transform_7(%arg0: i32) -> (i32, i32) {
    %c0_i32 = arith.constant 0 : i32
    %c0_i32_0 = arith.constant 0 : i32
    return %c0_i32, %arg0 : i32, i32
  }
}

</mosaic_0001>

<bundles_post_ra>
// kernel: tpu_custom_call.1
= control target key start
LH: loop header
LB: loop body
LE: loop exit
PB: predicated region body
PF: predicated region fallthrough
CT: control target
= control target key end

     0   :  { %s1280_s0 = inlined_call_operand.vmem [shape: f32[384,32], index: 0, kind: input, shape index: {}]   ;;  %s1281_s1 = inlined_call_operand.vmem [shape: bf16[64,32], index: 1, kind: input, shape index: {}]   ;;  %s1282_s2 = inlined_call_operand.vmem [shape: f32[64,1], index: 2, kind: input, shape index: {}]   ;;  %s1283_s3 = inlined_call_operand.vmem [shape: bf16[64,64], index: 3, kind: input, shape index: {}]   ;;  %s1284_s4 = inlined_call_operand.vmem [shape: f32[64,1], index: 4, kind: input, shape index: {}]   ;;  %s1285_s5 = inlined_call_operand.vmem [shape: f32[64,1], index: 5, kind: input, shape index: {}]   ;;  %s1286_s6 = inlined_call_operand.<no memory space> [shape: f32[1,1], index: 6, kind: input, shape index: {}]   ;;  %s1287_s7 = inlined_call_operand.hbm [shape: f32[1,384], index: 7, kind: output, shape index: {}]  }
   0x1   :  { %v12_v0 = vstv %s1286_s6 }
   0x2   :  { %13 = vst [vmem:[#allocation2] sm:$0x1] %v12_v0 }
   0x3   :  { %14 = vsyncpa [#allocation4], 0 }
   0x4   :  { %16 = vsyncpa [#allocation4 + $0x1], 0  ;;  %s1056_s26 = smov 0   ;;  %s1058_s27 = smov 0  }
   0x5   :  { %s1060_s28 = smov 0   ;;  %s1062_s29 = smov 0  }
   0x6 LB: > { %s805_s6 = sadd.s32 4294967295, %s1009_s29   ;;  %s806_s30 = sadd.s32 4294967294, %s1009_s29   ;;  %s1009_s29 = sphi %s1062_s29, %s1293_s29   ;;  %s1005_s28 = sphi %s1060_s28, %s1292_s28   ;;  %s1001_s27 = sphi %s1058_s27, %s1291_s27   ;;  %s997_s26 = sphi %s1056_s26, %s1290_s26  }
   0x7   : > { %s1079_s8 = sadd.s32 1, %s1009_s29   ;;  %s181_s9 = sadd.s32 1, %s1005_s28 }
   0x8   : > { %s178_s10 = ssub.s32 %s1009_s29, %s1079_s8  ;;  %p191_p0 = scmp.ne.s32.totalorder %s1005_s28, %s1001_s27 }
   0x9   : > { %p179_p1 = scmp.eq.s32.totalorder %s178_s10, 0  ;;  %p192_p2 = scmp.eq.s32.totalorder %s805_s6, 2 }
   0xa   : > { %p197_p3 = scmp.ne.s32.totalorder %s1001_s27, %s997_s26  ;;  %p198_p4 = scmp.eq.s32.totalorder %s806_s30, 2 }
   0xb   : > { %s1089_s11 = scalar_select %p179_p1, %s1005_s28, %s181_s9  }
   0xc   : > { %p1091_p5 = por %p192_p2, %p191_p0  ;;  %p1095_p6 = por %p198_p4, %p197_p3 }
   0xd   : > { %p809_p7 = scmp.ge.s32.totalorder %s1009_s29, 1  ;;  %p243_p8 = scmp.lt.s32.totalorder %s1009_s29, 4 }
   0xf   : > { %p244_p9 = pnand %p809_p7, %p243_p8 }
  0x10   : > { %s1101_s14 = sshll.u32 (!%p244_p9), %s805_s6, 4  ;;  %s272_s30 = sand.u32 (!%p244_p9), 1, %s1001_s27  }
  0x11   : > { %247 = sbr.rel (%p244_p9) target bundleno = 566 (0x236), region = 48  ;;  %p275_p10 = scmp.lt.s32.totalorder (!%p244_p9), %s1101_s14, 47 }
  0x12   : > { %s273_s9 = scalar_lea.vmem (!%p244_p9), [#allocation3], %s272_s30  ;;  %s1012_s19 = smov (!%p244_p9), [#allocation3]  }
  0x13   : > { %s751_s10 = sshll.u32 (!%p244_p9), %s273_s9, 4  ;;  %s752_s10 = int_to_ptr.vmem [resolvable:$true] %s751_s10 }
  0x14   : > { %s949_s18 = scalar_lea.vmem (!%p244_p9), %s752_s10, 16 }
  0x15   : > { %p950_p11 = scmp.ne.s32.totalorder (!%p244_p9), %s752_s10, %s949_s18 }
  0x16   : > { %v941_v1 = vld [vmem:[%s1281_s1] sm:$0xff]   ;;  %vm381_vm0 = vcmask 261120   ;;  %s276_s17 = scalar_select %p275_p10, %s1101_s14, 47  ;;  %v1011_v2 = vmov 0   ;;  %v319_v3 = vld [vmem:[%s1282_s2 + $0x30] sm:$0xff]  ;;  %v320_v5 = vld [vmem:[%s1282_s2 + $0x38] sm:$0xff] }
  0x17   : > { %867 = vmatprep.mubr.msk.bf16.mxu0 %vm381_vm0, %v941_v1  ;;  %939 = vset.pattern.permute.xlu0 %v1011_v2  ;;  %v317_v4 = vld [vmem:[%s1282_s2 + $0x20] sm:$0xff]  ;;  %v318_v6 = vld [vmem:[%s1282_s2 + $0x28] sm:$0xff]  ;;  %v315_v14 = vld [vmem:[%s1282_s2 + $0x10] sm:$0xff]  ;;  %vm571_vm1 = vcmask 523264   ;;  %p951_p12 = pnand %p950_p11, %p1091_p5 }
  0x18   : > { %940 = vset.pattern.permute.xlu1 %v1011_v2  ;;  %s811_s20 = sshll.u32 %s276_s17, 3  ;;  %353 = vperm.xlu0 %939, %v319_v3   ;;  %v316_v15 = vld [vmem:[%s1282_s2 + $0x18] sm:$0xff]  ;;  %v313_v18 = vld [vmem:[%s1282_s2] sm:$0xff]  ;;  %v314_v19 = vld [vmem:[%s1282_s2 + $0x8] sm:$0xff]  ;;  %s739_s17 = scalar_lea.sflag [#allocation4], %s272_s30 }
  0x19   : > { %s1118_s25 = scalar_lea.vmem %s1280_s0, %s811_s20  ;;  %343 = vperm.xlu1 %940, %v317_v4   ;;  %v503_v22 = vld [vmem:[%s1284_s4] sm:$0xff]  ;;  %v504_v23 = vld [vmem:[%s1284_s4 + $0x8] sm:$0xff]  ;;  %v505_v26 = vld [vmem:[%s1284_s4 + $0x10] sm:$0xff]  ;;  %p952_p13 = pneg %p951_p12 }
  0x1a   : > { %v295_v7 = vld [vmem:[%s1118_s25 + $0x70] sm:$0xff]  ;;  %v296_v8 = vld [vmem:[%s1118_s25 + $0x78] sm:$0xff]  ;;  %v293_v9 = vld [vmem:[%s1118_s25 + $0x60] sm:$0xff]  ;;  %s953_s20 = sshll.u32 %s1012_s19, 4  ;;  %s954_s20 = int_to_ptr.vmem [resolvable:$false] %s953_s20 }
  0x1b   : > { %v304_v10 = vpack.c.bf16 %v296_v8, %v295_v7  ;;  %v294_v11 = vld [vmem:[%s1118_s25 + $0x68] sm:$0xff]  ;;  %v291_v16 = vld [vmem:[%s1118_s25 + $0x50] sm:$0xff]  ;;  %v292_v17 = vld [vmem:[%s1118_s25 + $0x58] sm:$0xff]  ;;  %s955_s21 = scalar_lea.vmem %s954_s20, 32  ;;  %p956_p0 = scmp.lt.s32.totalorder %s752_s10, %s954_s20 }
  0x1c   : > { %v303_v12 = vpack.c.bf16 %v294_v11, %v293_v9  ;;  %358 = vperm.xlu0 %939, %v320_v5   ;;  %v302_v21 = vpack.c.bf16 %v292_v17, %v291_v16  ;;  %v289_v24 = vld [vmem:[%s1118_s25 + $0x40] sm:$0xff]  ;;  %v290_v25 = vld [vmem:[%s1118_s25 + $0x48] sm:$0xff]  ;;  %v506_v27 = vld [vmem:[%s1284_s4 + $0x18] sm:$0xff]  ;;  %p957_p1 = scmp.lt.s32.totalorder %s955_s21, %s949_s18 }
  0x1d   : > { %891 = vmatprep.subr.msk.bf16.mxu0 %vm381_vm0, %v304_v10  ;;  %v416_v13 = vsel %vm381_vm0, %v304_v10, 0  ;;  %348 = vperm.xlu1 %940, %v318_v6   ;;  %v301_v29 = vpack.c.bf16 %v290_v25, %v289_v24  ;;  %v657_v30 = vld [vmem:[%s1285_s5] sm:$0xff]  ;;  %v658_v31 = vld [vmem:[%s1285_s5 + $0x8] sm:$0xff]  ;;  %v287_v32 = vld [vmem:[%s1118_s25 + $0x30] sm:$0xff] }
  0x1e   : > { %852 = vmatpush3.bf16.xpose.msra.mxu0 %v416_v13  ;;  %v413_v20 = vsel %vm381_vm0, %v303_v12, 0  ;;  %v410_v28 = vsel %vm381_vm0, %v302_v21, 0  ;;  %v288_v33 = vld [vmem:[%s1118_s25 + $0x38] sm:$0xff]  ;;  %v507_v34 = vld [vmem:[%s1284_s4 + $0x20] sm:$0xff]  ;;  %v659_v35 = vld [vmem:[%s1285_s5 + $0x10] sm:$0xff]  ;;  %p958_p2 = por %p957_p1, %p956_p0 }
  0x1f   : > { %892 = vmatprep.subr.msk.bf16.mxu0 %vm381_vm0, %v303_v12  ;;  %v407_v36 = vsel %vm381_vm0, %v301_v29, 0  ;;  %v300_v37 = vpack.c.bf16 %v288_v33, %v287_v32  ;;  %v508_v38 = vld [vmem:[%s1284_s4 + $0x28] sm:$0xff]  ;;  %v660_v39 = vld [vmem:[%s1285_s5 + $0x18] sm:$0xff]  ;;  %v285_v40 = vld [vmem:[%s1118_s25 + $0x20] sm:$0xff] }
  0x20   : > { %333 = vperm.xlu0 %939, %v315_v14   ;;  %v286_v41 = vld [vmem:[%s1118_s25 + $0x28] sm:$0xff]  ;;  %v509_v42 = vld [vmem:[%s1284_s4 + $0x30] sm:$0xff]  ;;  %v661_v43 = vld [vmem:[%s1285_s5 + $0x20] sm:$0xff]  ;;  %p959_p3 = pnand %p958_p2, %p952_p13 }
  0x21   : > { %338 = vperm.xlu1 %940, %v316_v15   ;;  %v404_v44 = vsel %vm381_vm0, %v300_v37, 0  ;;  %v299_v45 = vpack.c.bf16 %v286_v41, %v285_v40  ;;  %v510_v46 = vld [vmem:[%s1284_s4 + $0x38] sm:$0xff]  ;;  %v662_v47 = vld [vmem:[%s1285_s5 + $0x28] sm:$0xff]  ;;  %v283_v48 = vld [vmem:[%s1118_s25 + $0x10] sm:$0xff] }
  0x22   : > { %v284_v49 = vld [vmem:[%s1118_s25 + $0x18] sm:$0xff]  ;;  %v663_v50 = vld [vmem:[%s1285_s5 + $0x30] sm:$0xff]  ;;  %v726_v54 = vld [vmem:[#allocation2] sm:$0x1] }
  0x23   : > { %v664_v51 = vld [vmem:[%s1285_s5 + $0x38] sm:$0xff]  ;;  %v401_v52 = vsel %vm381_vm0, %v299_v45, 0  ;;  %v298_v53 = vpack.c.bf16 %v284_v49, %v283_v48  ;;  %v281_v55 = vld [vmem:[%s1118_s25] sm:$0xff]  ;;  %v282_v56 = vld [vmem:[%s1118_s25 + $0x8] sm:$0xff]  ;;  %s749_s25 = scalar_lea.hbm %s1287_s7, %s1101_s14 }
  0x24   : > { %323 = vperm.xlu0 %939, %v313_v18   ;;  %v297_v58 = vpack.c.bf16 %v282_v56, %v281_v55  ;;  %v942_v60 = vld [vmem:[%s1281_s1 + $0x8] sm:$0xff]   ;;  %v943_v61 = vld [vmem:[%s1281_s1 + $0x10] sm:$0xff]   ;;  %v944_v62 = vld [vmem:[%s1281_s1 + $0x18] sm:$0xff]  }
  0x25   : > { %328 = vperm.xlu1 %940, %v314_v19   ;;  %v398_v57 = vsel %vm381_vm0, %v298_v53, 0  ;;  %v945_v63 = vld [vmem:[%s1283_s3] sm:$0xff]  }
  0x26   : > { %854 = vmatpush3.bf16.xpose.msra.mxu0 %v413_v20  ;;  %v395_v59 = vsel %vm381_vm0, %v297_v58, 0  ;;  %883 = vmatprep.mubr.msk.bf16.mxu1 %vm571_vm1, %v945_v63 }
  0x27   : > { %893 = vmatprep.subr.msk.bf16.mxu0 %vm381_vm0, %v302_v21 }
  0x28   : > { %513 = vperm.xlu0 %939, %v503_v22  }
  0x29   : > { %518 = vperm.xlu1 %940, %v504_v23  }
  0x2c   : > { %523 = vperm.xlu0 %939, %v505_v26  }
  0x2d   : > { %528 = vperm.xlu1 %940, %v506_v27  }
  0x2e   : > { %856 = vmatpush3.bf16.xpose.msra.mxu0 %v410_v28 }
  0x2f   : > { %894 = vmatprep.subr.msk.bf16.mxu0 %vm381_vm0, %v301_v29 }
  0x30   : > { %667 = vperm.xlu0 %939, %v657_v30  }
  0x31   : > { %672 = vperm.xlu1 %940, %v658_v31  }
  0x34   : > { %533 = vperm.xlu0 %939, %v507_v34  }
  0x35   : > { %677 = vperm.xlu1 %940, %v659_v35  }
  0x36   : > { %858 = vmatpush3.bf16.xpose.msra.mxu0 %v407_v36  ;;  %v946_v36 = vld [vmem:[%s1283_s3 + $0x8] sm:$0xff]  }
  0x37   : > { %895 = vmatprep.subr.msk.bf16.mxu0 %vm381_vm0, %v300_v37  ;;  %v947_v37 = vld [vmem:[%s1283_s3 + $0x10] sm:$0xff]  }
  0x38   : > { %538 = vperm.xlu0 %939, %v508_v38   ;;  %v948_v38 = vld [vmem:[%s1283_s3 + $0x18] sm:$0xff]  }
  0x39   : > { %682 = vperm.xlu1 %940, %v660_v39  }
  0x3c   : > { %543 = vperm.xlu0 %939, %v509_v42  }
  0x3d   : > { %687 = vperm.xlu1 %940, %v661_v43  }
  0x3e   : > { %860 = vmatpush3.bf16.xpose.msra.mxu0 %v404_v44 }
  0x3f   : > { %896 = vmatprep.subr.msk.bf16.mxu0 %vm381_vm0, %v299_v45 }
  0x40   : > { %548 = vperm.xlu0 %939, %v510_v46  }
  0x41   : > { %692 = vperm.xlu1 %940, %v662_v47  }
  0x44   : > { %697 = vperm.xlu0 %939, %v663_v50  }
  0x45   : > { %702 = vperm.xlu1 %940, %v664_v51  }
  0x46   : > { %862 = vmatpush3.bf16.xpose.msra.mxu0 %v401_v52 }
  0x47   : > { %897 = vmatprep.subr.msk.bf16.mxu0 %vm381_vm0, %v298_v53 }
  0x48   : > { %729 = vperm.xlu0 %939, %v726_v54  }
  0x4e   : > { %864 = vmatpush3.bf16.xpose.msra.mxu0 %v398_v57 }
  0x4f   : > { %898 = vmatprep.subr.msk.bf16.mxu0 %vm381_vm0, %v297_v58 }
  0x56   : > { %866 = vmatpush3.bf16.xpose.msra.mxu0 %v395_v59 }
  0x5d   : > { %868 = vmatmul.mubr.msk.bf16.vlgmr.msra.gmra.mxu0 %vm381_vm0, %v942_v60 }
  0x5e   : > { %871 = vmatprep.mubr.msk.bf16.mxu0 %vm381_vm0, %v943_v61 }
  0x65   : > { %872 = vmatmul.mubr.msk.bf16.gmra.mxu0 %vm381_vm0, %v944_v62 }
  0x93   : > { %v354_v2 = vpop.permute.xlu0 %353 }
  0x94   : > { %v344_v0 = vpop.permute.xlu1 %343 }
  0x97   : > { %v359_v7 = vpop.permute.xlu0 %358 }
  0x98   : > { %v349_v5 = vpop.permute.xlu1 %348 }
  0x9b   : > { %v334_v15 = vpop.permute.xlu0 %333 }
  0x9c   : > { %v339_v11 = vpop.permute.xlu1 %338 }
  0x9f   : > { %v324_v29 = vpop.permute.xlu0 %323 }
  0xa0   : > { %v329_v25 = vpop.permute.xlu1 %328 }
  0xa3   : > { %v514_v39 = vpop.permute.xlu0 %513 }
  0xa4   : > { %v519_v40 = vpop.permute.xlu1 %518 }
  0xa7   : > { %v524_v41 = vpop.permute.xlu0 %523 }
  0xa8   : > { %v529_v42 = vpop.permute.xlu1 %528 }
  0xab   : > { %v668_v43 = vpop.permute.xlu0 %667 }
  0xac   : > { %v673_v44 = vpop.permute.xlu1 %672 }
  0xaf   : > { %v534_v45 = vpop.permute.xlu0 %533 }
  0xb0   : > { %v678_v46 = vpop.permute.xlu1 %677 }
  0xb3   : > { %v539_v48 = vpop.permute.xlu0 %538 }
  0xb4   : > { %v683_v51 = vpop.permute.xlu1 %682 }
  0xb7   : > { %v544_v58 = vpop.permute.xlu0 %543 }
  0xb8   : > { %v688_v62 = vpop.permute.xlu1 %687 }
 0x11d   : > { %v869_v1 = vpop.f32.mrf.mxu0 }
 0x11e   : > { %v461_v21 = vadd.f32 %v869_v1, %v334_v15  ;;  %v693_v15 = vpop.permute.xlu1 %692 }
 0x11f   : > { %v452_v3 = vpop.f32.mrf.mxu0 }
 0x120   : > { %v485_v30 = vmax.f32 %v461_v21, 0.0  ;;  %v453_v31 = vadd.f32 %v452_v3, %v324_v29  ;;  %v732_v29 = vlaneseq }
 0x121   : > { %v870_v4 = vpop.f32.mrf.mxu0 }
 0x122   : > { %v464_v17 = vadd.f32 %v870_v4, %v339_v11  ;;  %v483_v34 = vmax.f32 %v453_v31, 0.0 }
 0x123   : > { %v455_v6 = vpop.f32.mrf.mxu0 }
 0x124   : > { %v486_v26 = vmax.f32 %v464_v17, 0.0  ;;  %v456_v27 = vadd.f32 %v455_v6, %v329_v25 }
 0x125   : > { %v873_v8 = vpop.f32.mrf.mxu0 }
 0x126   : > { %v477_v10 = vadd.f32 %v873_v8, %v354_v2  ;;  %v500_v32 = vpack.c.bf16 %v486_v26, %v485_v30  ;;  %v484_v33 = vmax.f32 %v456_v27, 0.0  ;;  %v703_v26 = vpop.permute.xlu1 %702 }
 0x127   : > { %v468_v9 = vpop.f32.mrf.mxu0 }
 0x128   : > { %v469_v13 = vadd.f32 %v468_v9, %v344_v0  ;;  %v489_v18 = vmax.f32 %v477_v10, 0.0  ;;  %v499_v35 = vpack.c.bf16 %v484_v33, %v483_v34  ;;  %v549_v9 = vpop.permute.xlu0 %548 }
 0x129   : > { %v874_v12 = vpop.f32.mrf.mxu0 }
 0x12a   : > { %v480_v14 = vadd.f32 %v874_v12, %v359_v7  ;;  %v487_v22 = vmax.f32 %v469_v13, 0.0 }
 0x12b   : > { %v471_v16 = vpop.f32.mrf.mxu0 }
 0x12c   : > { %v490_v19 = vmax.f32 %v480_v14, 0.0  ;;  %v472_v20 = vadd.f32 %v471_v16, %v349_v5 }
 0x12e   : > { %v488_v23 = vmax.f32 %v472_v20, 0.0  ;;  %v502_v24 = vpack.c.bf16 %v490_v19, %v489_v18 }
 0x130   : > { %v501_v28 = vpack.c.bf16 %v488_v23, %v487_v22  ;;  %875 = vmatprep.subr.bf16.mxu1 %v502_v24  ;;  %v698_v23 = vpop.permute.xlu0 %697 }
 0x131   : > { %876 = vmatpush3.bf16.msra.mxu1 %v502_v24 }
 0x132   : > { %877 = vmatprep.subr.bf16.mxu1 %v501_v28 }
 0x135   : > { %878 = vmatpush3.bf16.msra.mxu1 %v501_v28 }
 0x136   : > { %879 = vmatprep.subr.bf16.mxu1 %v500_v32 }
 0x139   : > { %880 = vmatpush3.bf16.msra.mxu1 %v500_v32  ;;  %v733_v32 = vshrl.u32 %v732_v29, 7 }
 0x13a   : > { %881 = vmatprep.subr.bf16.mxu1 %v499_v35 }
 0x13d   : > { %882 = vmatpush3.bf16.msra.mxu1 %v499_v35  ;;  %v734_v35 = vsub.s32 0, %v733_v32 }
 0x140   : > { %884 = vmatmul.mubr.msk.bf16.vlgmr.msra.gmra.mxu1 %vm571_vm1, %v946_v36 }
 0x141   : > { %887 = vmatprep.mubr.msk.bf16.mxu1 %vm571_vm1, %v947_v37  ;;  %v730_v37 = vpop.permute.xlu0 %729 }
 0x148   : > { %888 = vmatmul.mubr.msk.bf16.gmra.mxu1 %vm571_vm1, %v948_v38 }
 0x200   : > { %v885_v47 = vpop.f32.mrf.mxu1 }
 0x201   : > { %v627_v53 = vadd.f32 %v885_v47, %v524_v41 }
 0x202   : > { %v618_v49 = vpop.f32.mrf.mxu1 }
 0x203   : > { %v619_v50 = vadd.f32 %v618_v49, %v514_v39  ;;  %v651_v60 = vmax.f32 %v627_v53, 0.0  ;;  %v735_v39 = vrot.slane %v730_v37, %v734_v35 }
 0x204   : > { %v886_v52 = vpop.f32.mrf.mxu1 }
 0x205   : > { %v649_v55 = vmax.f32 %v619_v50, 0.0  ;;  %v630_v56 = vadd.f32 %v886_v52, %v529_v42  ;;  %v707_v5 = vmul.f32 %v678_v46, %v651_v60 }
 0x206   : > { %v621_v54 = vpop.f32.mrf.mxu1 }
 0x207   : > { %v622_v57 = vadd.f32 %v621_v54, %v519_v40  ;;  %v705_v0 = vmul.f32 %v668_v43, %v649_v55  ;;  %v652_v1 = vmax.f32 %v630_v56, 0.0 }
 0x208   : > { %v889_v59 = vpop.f32.mrf.mxu1 }
 0x209   : > { %v650_v61 = vmax.f32 %v622_v57, 0.0  ;;  %v643_v7 = vadd.f32 %v889_v59, %v544_v58  ;;  %v708_v11 = vmul.f32 %v683_v51, %v652_v1 }
 0x20a   : > { %v634_v63 = vpop.f32.mrf.mxu1 }
 0x20b   : > { %v706_v2 = vmul.f32 %v673_v44, %v650_v61  ;;  %v635_v3 = vadd.f32 %v634_v63, %v534_v45  ;;  %v655_v16 = vmax.f32 %v643_v7, 0.0 }
 0x20c   : > { %v890_v4 = vpop.f32.mrf.mxu1 }
 0x20d   : > { %v713_v6 = vadd.f32 %v706_v2, %v705_v0  ;;  %v653_v8 = vmax.f32 %v635_v3, 0.0  ;;  %v646_v13 = vadd.f32 %v890_v4, %v549_v9  ;;  %v711_v24 = vmul.f32 %v698_v23, %v655_v16 }
 0x20e   : > { %v637_v10 = vpop.f32.mrf.mxu1 }
 0x20f   : > { %v714_v12 = vadd.f32 %v713_v6, %v707_v5  ;;  %v638_v14 = vadd.f32 %v637_v10, %v539_v48  ;;  %v709_v17 = vmul.f32 %v688_v62, %v653_v8  ;;  %v656_v21 = vmax.f32 %v646_v13, 0.0 }
 0x211   : > { %v715_v18 = vadd.f32 %v714_v12, %v708_v11  ;;  %v654_v19 = vmax.f32 %v638_v14, 0.0  ;;  %v712_v27 = vmul.f32 %v703_v26, %v656_v21 }
 0x213   : > { %v716_v20 = vadd.f32 %v715_v18, %v709_v17  ;;  %v710_v22 = vmul.f32 %v693_v15, %v654_v19 }
 0x215   : > { %v717_v25 = vadd.f32 %v716_v20, %v710_v22 }
 0x217   : > { %v718_v28 = vadd.f32 %v717_v25, %v711_v24 }
 0x219   : > { %v719_v30 = vadd.f32 %v718_v28, %v712_v27 }
 0x21b   : > { %v720_v31 = vrot.slane %v719_v30, 4 }
 0x21d   : > { %v721_v33 = vadd.f32 %v720_v31, %v719_v30 }
 0x21f   : > { %v722_v34 = vrot.slane %v721_v33, 2 }
 0x221   : > { %v723_v36 = vadd.f32 %v722_v34, %v721_v33 }
 0x223   : > { %v724_v38 = vrot.slane %v723_v36, 1 }
 0x225   : > { %v725_v40 = vadd.f32 %v724_v38, %v723_v36 }
 0x227   : > { %v736_v41 = vadd.f32 %v735_v39, %v725_v40 }
 0x229   : > { %737 = vst [vmem:[%s273_s9] sm:$0x1] %v736_v41 }
 0x22a   : > { %962 = shalt.err (!%p959_p3)
}
 0x22b   : > { %s963_s22 = scalar_lea.hbm %s749_s25, 16  ;;  %s967_s24 = scalar_lea.hbm %s1287_s7, 48 }
 0x22c   : > { %p964_p4 = scmp.ne.s32.totalorder %s749_s25, %s963_s22  ;;  %p968_p9 = scmp.lt.s32.totalorder %s749_s25, %s1287_s7 }
 0x22d   : > { %p969_p10 = scmp.lt.s32.totalorder %s967_s24, %s963_s22 }
 0x22e   : > { %p965_p7 = pnand %p964_p4, %p1091_p5 }
 0x22f   : > { %p970_p11 = por %p969_p10, %p968_p9 }
 0x230   : > { %p966_p8 = pneg %p965_p7 }
 0x232   : > { %p971_p12 = pnand %p970_p11, %p966_p8 }
 0x234   : > { %974 = shalt.err (!%p971_p12)
}
 0x235   : > { %899 = dma.vmem_to_hbm [thread:$0]  (%p1091_p5), %s752_s10, 16, %s749_s25, %s739_s17  }
 0x236 PF: > { %p905_p13 = scmp.ge.s32.totalorder %s1009_s29, 2  ;;  %s763_s9 = sand.u32 1, %s997_s26  }
 0x237   : > { %s764_s15 = scalar_lea.sflag [#allocation4], %s763_s9 }
 0x238   : > { %p902_p0 = pnand %p905_p13, %p1095_p6 }
 0x23a   : > { %p903_p1 = pneg %p902_p0 }
 0x23c   : > { %992 = dma.done.wait (%p903_p1), %s764_s15, 16  }
 0x23d   : > { %994 = vsyncadd (%p903_p1), %s764_s15, 4294967280  ;;  %p19_p2 = scmp.ge.s32.totalorder %s1079_s8, 5   ;;  %s1290_s26 = smov %s1001_s27 }
 0x23e   : > { %s1291_s27 = smov %s1005_s28  ;;  %s1292_s28 = smov %s1089_s11 }
 0x23f   : > { %s1293_s29 = smov %s1079_s8  ;;  %21 = sbr.rel (!%p19_p2) target bundleno = 6 (0x6), region = 83 }
 0x244   :  { %768 = vsyncpa [#allocation4], 1 }
 0x245   :  { %770 = vsyncpa [#allocation4 + $0x1], 1 }

</bundles_post_ra>
